<compile_context>
chip_gen: v5e
topology: v5e:2x2
jax: 0.10.0
libtpu: 0.0.40
codegen_flags: <defaults>
</compile_context>

<pallas_src>
import jax
import jax.numpy as jnp
from jax.experimental import pallas as pl
from jax.experimental.pallas import tpu as pltpu


_SMALL_PROBLEM_FLOPS = 1 << 20          # below this, XLA beats kernel launch cost
_VMEM_BUDGET_BYTES = 40 * 1024 * 1024   # conservative double-buffered estimate
_VMEM_LIMIT_BYTES = 48 * 1024 * 1024    # scoped VMEM limit (safe on v7x's 64 MiB)


# --------------------------------------------------------------------------
# Kernels.  Output block is (tm, 3N): three lane-dense replica slabs.
# --------------------------------------------------------------------------
def _mm_cat3_kernel_single_k(x1_ref, x2_ref, o_ref):
    """K fits in one tile: no init/accumulate passes, just compute + 3 stores."""
    n = x2_ref.shape[1]
    res = jnp.dot(
        x1_ref[...], x2_ref[...], preferred_element_type=jnp.float32
    ).astype(o_ref.dtype)
    for r in range(3):                      # static, unrolled; full-width stores
        o_ref[:, r * n:(r + 1) * n] = res


def _mm_cat3_kernel_multi_k_f32(x1_ref, x2_ref, o_ref):
    """f32 output: first replica slab of the resident output block is the acc."""
    n = x2_ref.shape[1]
    k = pl.program_id(1)

    @pl.when(k == 0)
    def _init():
        o_ref[:, :n] = jnp.zeros((o_ref.shape[0], n), o_ref.dtype)

    o_ref[:, :n] += jnp.dot(
        x1_ref[...], x2_ref[...], preferred_element_type=jnp.float32
    )

    @pl.when(k == pl.num_programs(1) - 1)
    def _replicate():
        res = o_ref[:, :n]
        o_ref[:, n:2 * n] = res
        o_ref[:, 2 * n:3 * n] = res


def _mm_cat3_kernel_multi_k_acc(x1_ref, x2_ref, o_ref, acc_ref):
    """Non-f32 output: keep an f32 VMEM accumulator, cast once at writeback."""
    n = x2_ref.shape[1]
    k = pl.program_id(1)

    @pl.when(k == 0)
    def _init():
        acc_ref[...] = jnp.zeros_like(acc_ref)

    acc_ref[...] += jnp.dot(
        x1_ref[...], x2_ref[...], preferred_element_type=jnp.float32
    )

    @pl.when(k == pl.num_programs(1) - 1)
    def _writeback():
        res = acc_ref[...].astype(o_ref.dtype)
        for r in range(3):
            o_ref[:, r * n:(r + 1) * n] = res


# --------------------------------------------------------------------------
# Wrapper.
# --------------------------------------------------------------------------
def _round_up(x: int, m: int) -> int:
    return ((x + m - 1) // m) * m


def mm_cat3(x1: jax.Array, x2: jax.Array, *, tm: int = 256, tk: int = 512,
            precision_bf16: bool = False, force_pallas: bool = False) -> jax.Array:
    M, K = x1.shape
    K2, N = x2.shape
    assert K == K2, "inner dims must match"

    # torch.mm keeps the (common) input dtype; derive output dtype from inputs.
    out_dtype = jnp.result_type(x1.dtype, x2.dtype)

    # Opt-in bf16 input cast (MXU-native); accumulation stays f32, output dtype
    # is unchanged.  Off by default to preserve torch.mm f32 numerics.
    if precision_bf16:
        x1 = x1.astype(jnp.bfloat16)
        x2 = x2.astype(jnp.bfloat16)

    # ---- small-problem fast path: at the module's real shape (2x2 @ 2x2 ->
    # 2x6) a pallas_call is pure launch/DMA overhead. ----
    if not force_pallas and (M * N * K) < _SMALL_PROBLEM_FLOPS:
        p = jnp.dot(x1, x2, preferred_element_type=jnp.float32).astype(out_dtype)
        return jnp.concatenate([p, p, p], axis=1)

    in_bytes = x1.dtype.itemsize
    out_bytes = jnp.dtype(out_dtype).itemsize

    # ---- tile selection: tn is forced to N so the whole (tm, 3N) output row
    # slab is lane-dense (3x replication = three unmasked full-width stores,
    # no reshape).  M and K are padded with zeros up to tile multiples. ----
    tm_eff = tm if M > tm else M
    tk_eff = tk if K > tk else K

    def _vmem_est(tm_e, tk_e):
        est = 2 * tm_e * tk_e * in_bytes          # x1 block, double-buffered
        est += 2 * tk_e * N * in_bytes            # x2 block
        est += 2 * tm_e * 3 * N * out_bytes       # lane-dense output slab
        if K > tk_e and out_dtype != jnp.float32:
            est += tm_e * N * 4                   # f32 accumulator scratch
        return est

    # Shrink the row tile first if the output slab would overflow VMEM.
    if M > tm:
        while _vmem_est(tm_eff, tk_eff) > _VMEM_BUDGET_BYTES and tm_eff > 8:
            tm_eff //= 2
    if K > tk:
        while _vmem_est(tm_eff, tk_eff) > _VMEM_BUDGET_BYTES and tk_eff > 128:
            tk_eff //= 2

    if _vmem_est(tm_eff, tk_eff) > _VMEM_BUDGET_BYTES:
        # TODO(synk): column-tile the replicated output for very wide N (needs
        # a 3-slab-aware output index_map); fall back to plain XLA for now.
        p = jnp.dot(x1, x2, preferred_element_type=jnp.float32).astype(out_dtype)
        return jnp.concatenate([p, p, p], axis=1)

    M_pad = _round_up(M, tm_eff) if M > tm_eff else M
    K_pad = _round_up(K, tk_eff) if K > tk_eff else K
    if M_pad != M or K_pad != K:
        x1 = jnp.pad(x1, ((0, M_pad - M), (0, K_pad - K)))
    if K_pad != K:
        x2 = jnp.pad(x2, ((0, K_pad - K), (0, 0)))

    grid = (M_pad // tm_eff, K_pad // tk_eff)
    gk = grid[1]

    if gk == 1:
        kernel = _mm_cat3_kernel_single_k
        scratch_shapes = []
    elif out_dtype == jnp.float32:
        kernel = _mm_cat3_kernel_multi_k_f32
        scratch_shapes = []
    else:
        kernel = _mm_cat3_kernel_multi_k_acc
        scratch_shapes = [pltpu.VMEM((tm_eff, N), jnp.float32)]

    out = pl.pallas_call(
        kernel,
        out_shape=jax.ShapeDtypeStruct((M_pad, 3 * N), out_dtype),
        grid_spec=pltpu.PrefetchScalarGridSpec(
            num_scalar_prefetch=0,
            grid=grid,
            in_specs=[
                pl.BlockSpec((tm_eff, tk_eff), lambda i, k: (i, k)),
                pl.BlockSpec((tk_eff, N), lambda i, k: (k, 0)),
            ],
            # Same output block across the k axis -> resident (accumulator) slab.
            out_specs=pl.BlockSpec((tm_eff, 3 * N), lambda i, k: (i, 0)),
            scratch_shapes=scratch_shapes,
        ),
        compiler_params=pltpu.CompilerParams(
            dimension_semantics=("parallel", "arbitrary"),
            vmem_limit_bytes=_VMEM_LIMIT_BYTES,
        ),
    )(x1, x2)

    return out if M_pad == M else out[:M]


if __name__ == "__main__":
    key = jax.random.PRNGKey(0)
    k1, k2, k3, k4 = jax.random.split(key, 4)

    # --- Module's real shapes: x1, x2 are (2, 2) -> output (2, 6). ---
    x1 = jax.random.normal(k1, (2, 2), dtype=jnp.float32)
    x2 = jax.random.normal(k2, (2, 2), dtype=jnp.float32)
    ref = jnp.concatenate([x1 @ x2] * 3, axis=1)

    # Auto dispatch (tiny problem -> fast path).
    out = mm_cat3(x1, x2)
    jax.block_until_ready(out)
    assert out.shape == (2, 6) and out.dtype == ref.dtype
    assert jnp.allclose(out, ref, atol=1e-5, rtol=1e-5)

    # Force the Pallas kernel at the module's shape (single-tile, single-k path).
    out_p = mm_cat3(x1, x2, force_pallas=True)
    jax.block_until_ready(out_p)
    assert out_p.shape == (2, 6)
    assert jnp.allclose(out_p, ref, atol=1e-5, rtol=1e-5)

    # Multi-tile grid exercising the resident-output accumulator path:
    # grid = (2, 4), output block (128, 3*384), k-accumulation in the f32 slab.
    a = jax.random.normal(k3, (256, 512), dtype=jnp.float32)
    b = jax.random.normal(k4, (512, 384), dtype=jnp.float32)
    out2 = mm_cat3(a, b, tm=128, tk=128, force_pallas=True)
    jax.block_until_ready(out2)
    ref2 = jnp.concatenate([a @ b] * 3, axis=1)
    assert out2.shape == (256, 3 * 384)
    assert jnp.allclose(out2, ref2, atol=1e-4, rtol=1e-4)

    print("KERNEL_OK")
</pallas_src>

<mosaic_0001>
module attributes {stable_mosaic.version = 11 : i64} {
  func.func @_mm_cat3_kernel_single_k(%arg0: i32, %arg1: i32, %arg2: memref<2x2xf32, #tpu.memory_space<vmem>>, %arg3: memref<2x2xf32, #tpu.memory_space<vmem>>, %arg4: memref<2x6xf32, #tpu.memory_space<vmem>>) attributes {dimension_semantics = [#tpu.dimension_semantics<parallel>, #tpu.dimension_semantics<arbitrary>], iteration_bounds = array<i64: 1, 1>, scalar_prefetch = 0 : i64, scratch_operands = 0 : i64, tpu.core_type = #tpu.core_type<tc>, window_params = [{transform_indices = @transform_0, window_bounds = array<i64: 2, 2>}, {transform_indices = @transform_1, window_bounds = array<i64: 2, 2>}, {transform_indices = @transform_2, window_bounds = array<i64: 2, 6>}]} {
    %c0 = arith.constant 0 : index
    %c0_0 = arith.constant 0 : index
    %0 = vector.load %arg2[%c0, %c0_0] : memref<2x2xf32, #tpu.memory_space<vmem>>, vector<2x2xf32>
    %c0_1 = arith.constant 0 : index
    %c0_2 = arith.constant 0 : index
    %1 = vector.load %arg3[%c0_1, %c0_2] : memref<2x2xf32, #tpu.memory_space<vmem>>, vector<2x2xf32>
    %cst = arith.constant dense<0.000000e+00> : vector<2x2xf32>
    %2 = tpu.matmul %0, %1, %cst {dimension_numbers = #tpu.dot_dimension_numbers<[1], [0], [0], [1], [0, 0, 1, 1], [], []>} : vector<2x2xf32>, vector<2x2xf32>, vector<2x2xf32> -> vector<2x2xf32>
    %c0_3 = arith.constant 0 : index
    %c0_4 = arith.constant 0 : index
    %3 = vector.load %arg4[%c0_3, %c0_4] : memref<2x6xf32, #tpu.memory_space<vmem>>, vector<2x2xf32>
    tpu.vector_store %arg4[%c0_3, %c0_4], %2 {strides = array<i32>} : memref<2x6xf32, #tpu.memory_space<vmem>>, vector<2x2xf32>,
    %c0_5 = arith.constant 0 : index
    %c2 = arith.constant 2 : index
    %4 = vector.load %arg4[%c0_5, %c2] : memref<2x6xf32, #tpu.memory_space<vmem>>, vector<2x2xf32>
    tpu.vector_store %arg4[%c0_5, %c2], %2 {strides = array<i32>} : memref<2x6xf32, #tpu.memory_space<vmem>>, vector<2x2xf32>,
    %c0_6 = arith.constant 0 : index
    %c4 = arith.constant 4 : index
    %5 = vector.load %arg4[%c0_6, %c4] : memref<2x6xf32, #tpu.memory_space<vmem>>, vector<2x2xf32>
    tpu.vector_store %arg4[%c0_6, %c4], %2 {strides = array<i32>} : memref<2x6xf32, #tpu.memory_space<vmem>>, vector<2x2xf32>,
    return
  }
  func.func @transform_0(%arg0: i32, %arg1: i32) -> (i32, i32) {
    %c0_i32 = arith.constant 0 : i32
    return %arg0, %arg1 : i32, i32
  }
  func.func @transform_1(%arg0: i32, %arg1: i32) -> (i32, i32) {
    %c0_i32 = arith.constant 0 : i32
    %c0_i32_0 = arith.constant 0 : i32
    return %arg1, %c0_i32 : i32, i32
  }
  func.func @transform_2(%arg0: i32, %arg1: i32) -> (i32, i32) {
    %c0_i32 = arith.constant 0 : i32
    %c0_i32_0 = arith.constant 0 : i32
    return %arg0, %c0_i32 : i32, i32
  }
}

</mosaic_0001>

<bundles_post_ra>
// kernel: tpu_custom_call.1
= control target key start
LH: loop header
LB: loop body
LE: loop exit
PB: predicated region body
PF: predicated region fallthrough
CT: control target
= control target key end

     0   :  { %7 = vsyncpa [#allocation3], 0  ;;  %s215_s0 = inlined_call_operand.hbm [shape: f32[2,2], index: 0, kind: input, shape index: {}]   ;;  %s216_s1 = inlined_call_operand.hbm [shape: f32[2,2], index: 1, kind: input, shape index: {}]   ;;  %s217_s2 = inlined_call_operand.hbm [shape: f32[2,6], index: 2, kind: output, shape index: {}]  }
   0x1   :  { %8 = vsyncpa [#allocation6], 0 }
   0x2   :  { %9 = vsyncpa [#allocation4], 0  ;;  %s15_s11 = sshll.u32 %s215_s0, 4  ;;  %s186_s12 = smov [#allocation2]   ;;  %s16_s11 = int_to_ptr.hbm [resolvable:$true] %s15_s11 }
   0x3   :  { %s17_s13 = sshll.u32 %s186_s12, 4  ;;  %s26_s16 = sshll.u32 %s216_s1, 4  ;;  %s18_s13 = int_to_ptr.vmem [resolvable:$true] %s17_s13  ;;  %s27_s16 = int_to_ptr.hbm [resolvable:$true] %s26_s16 }
   0x4   :  { %20 = dma.hbm_to_vmem [thread:$0]  %s16_s11, 32, %s18_s13, [#allocation3]  }
   0x5   :  { %s187_s17 = smov [#allocation5]  }
   0x6   :  { %s28_s18 = sshll.u32 %s187_s17, 4  ;;  %s29_s18 = int_to_ptr.vmem [resolvable:$true] %s28_s18 }
   0x7   :  { %31 = dma.hbm_to_vmem [thread:$0]  %s27_s16, 32, %s29_s18, [#allocation6]  }
   0x8   :  { %180 = dma.done.wait [#allocation3], 32  }
   0x9   :  { %181 = vsyncadd [#allocation3], 4294967264 }
   0xa   :  { %182 = dma.done.wait [#allocation6], 32  }
   0xb   :  { %183 = vsyncadd [#allocation6], 4294967264  ;;  %vm46_vm0 = vcmask 1041408   ;;  %vm42_vm1 = vcmask 15360   ;;  %v41_v0 = vld [vmem:[#allocation5] sm:$0x3] }
   0xc   :  { %v40_v1 = vld [vmem:[#allocation2] sm:$0x3]  ;;  %101 = vmatpush.msk.msra.mxu0 %vm46_vm0, %v41_v0  ;;  %vm70_vm2 = vcmask 9216   ;;  %s188_s0 = smov 2   ;;  %s189_s1 = smov 4   ;;  %vm76_vm3 = vcmask 25616  }
   0xd   :  { %102 = vmatmul.msk.f32.vlgmr.msra.gmra.mxu0 %vm42_vm1, %v40_v1  ;;  %s190_s19 = smov [#allocation7]   ;;  %s90_s23 = sshll.u32 %s217_s2, 4  ;;  %vm81_vm4 = vcmask 42016   ;;  %s91_s23 = int_to_ptr.hbm [resolvable:$true] %s90_s23 }
   0xe   :  { %s88_s20 = sshll.u32 %s190_s19, 4  ;;  %s89_s20 = int_to_ptr.vmem [resolvable:$true] %s88_s20 }
  0x8a   :  { %v67_v2 = vpop.f32.mrf.mxu0 }
  0x8b   :  { %71 = vst.msk [vmem:[#allocation7] sm:$0x3] %vm70_vm2, %v67_v2  ;;  %73 = vrot.lane.b32.xlu0 %v67_v2, %s188_s0 }
  0x93   :  { %78 = vrot.lane.b32.xlu0 %v67_v2, %s189_s1 }
  0xfd   :  { %v74_v3 = vpop.permute.xlu0 %73 }
  0xfe   :  { %77 = vst.msk [vmem:[#allocation7] sm:$0x3] %vm76_vm3, %v74_v3 }
 0x105   :  { %v79_v4 = vpop.permute.xlu0 %78 }
 0x106   :  { %82 = vst.msk [vmem:[#allocation7] sm:$0x3] %vm81_vm4, %v79_v4 }
 0x107   :  { %93 = dma.vmem_to_hbm [thread:$0]  %s89_s20, 32, %s91_s23, [#allocation4]  }
 0x108   :  { %184 = dma.done.wait [#allocation4], 32  }
 0x109   :  { %185 = vsyncadd [#allocation4], 4294967264 }
 0x10a   :  { %98 = vsyncpa [#allocation3], 1 }
 0x10b   :  { %99 = vsyncpa [#allocation6], 1 }
 0x10c   :  { %100 = vsyncpa [#allocation4], 1 }

</bundles_post_ra>
